<compile_context>
chip_gen: v7x
topology: tpu7x:2x2x1
jax: 0.10.0
libtpu: 0.0.40
codegen_flags: <defaults>
</compile_context>

<pallas_src>
import jax
import jax.numpy as jnp
from jax import lax
from jax.experimental import pallas as pl
from jax.experimental.pallas import tpu as pltpu


def _round_up(x, m):
    return ((x + m - 1) // m) * m


# ----------------------- weight prep (one-time, wrapper-side) -----------------------
def _pad_gates_ih(w_ih, b, Hp):
    """(I, 4H), (1, 4H) -> zero-padded gate-major (I, 4*Hp), (1, 4*Hp)."""
    I, H4 = w_ih.shape
    H = H4 // 4
    w = jnp.zeros((I, 4, Hp), w_ih.dtype).at[:, :, :H].set(w_ih.reshape(I, 4, H))
    bp = jnp.zeros((1, 4, Hp), b.dtype).at[:, :, :H].set(b.reshape(1, 4, H))
    return w.reshape(I, 4 * Hp), bp.reshape(1, 4 * Hp)


def _block_diag_hh(w_hh_f, w_hh_b, Hp):
    """Two (H, 4H) -> one (2*Hp, 8*Hp) block-diagonal recurrent weight.

    Rows: [fwd h (Hp) | bwd h (Hp)].  Columns: gate-major groups of width
    G = 2*Hp, each group = [fwd Hp | bwd Hp] (matching the fused gate layout).
    """
    H = w_hh_f.shape[0]
    G = 2 * Hp
    w = jnp.zeros((G, 4, G), jnp.float32)
    w = w.at[0:H, :, 0:H].set(w_hh_f.reshape(H, 4, H))
    w = w.at[Hp:Hp + H, :, Hp:Hp + H].set(w_hh_b.reshape(H, 4, H))
    return w.reshape(G, 4 * G)


def _pad_fc(w_fc, Hp):
    """(2H, O) -> (2*Hp, O): rows [0:H]=fwd, [Hp:Hp+H]=bwd, zeros elsewhere."""
    H2, O = w_fc.shape
    H = H2 // 2
    w = jnp.zeros((2 * Hp, O), w_fc.dtype)
    w = w.at[0:H].set(w_fc[0:H])
    w = w.at[Hp:Hp + H].set(w_fc[H:2 * H])
    return w


# ------------------- hoisted input projection (one big MXU matmul) -------------------
def _proj_kernel(x_ref, w_ref, b_ref, o_ref):
    o_ref[...] = (jnp.dot(x_ref[...], w_ref[...], preferred_element_type=jnp.float32)
                  + b_ref[...]).astype(o_ref.dtype)


def _input_projection(x2d, w_cat, b_cat):
    """(T*B, I) @ (I, 8*Hp) + bias, f32 accumulation.  Single block (toy sizes);
    at production sizes this would be row-tiled over a grid."""
    M, K = x2d.shape
    N = w_cat.shape[1]
    return pl.pallas_call(
        _proj_kernel,
        out_shape=jax.ShapeDtypeStruct((M, N), jnp.float32),
        grid_spec=pltpu.PrefetchScalarGridSpec(
            num_scalar_prefetch=0,
            grid=(1,),
            in_specs=[
                pl.BlockSpec((M, K), lambda i: (0, 0)),
                pl.BlockSpec((K, N), lambda i: (0, 0)),
                pl.BlockSpec((1, N), lambda i: (0, 0)),
            ],
            out_specs=pl.BlockSpec((M, N), lambda i: (0, 0)),
        ),
    )(x2d, w_cat, b_cat)


# ------------------- fused bidirectional recurrence + fc epilogue -------------------
def _make_bilstm_kernel(T, Hp, matmul_dtype):
    G = 2 * Hp  # fused per-gate group width (fwd Hp | bwd Hp) == 128 lanes

    def kernel(xp_ref, whh_ref, wfc_ref, bfc_ref, out_ref, h_scr, c_scr, accf, accb):
        t = pl.program_id(0)

        @pl.when(t == 0)
        def _():
            h_scr[...] = jnp.zeros_like(h_scr)
            c_scr[...] = jnp.zeros_like(c_scr)

        # gates: (B, 4G); columns are gate-major i|f|g|o, each group a full
        # 128-lane [fwd Hp | bwd Hp] slice.  Single block-diagonal MXU matmul.
        gates = xp_ref[0] + jnp.dot(h_scr[...].astype(matmul_dtype), whh_ref[...],
                                    preferred_element_type=jnp.float32)
        i_g = jax.nn.sigmoid(gates[:, 0 * G:1 * G])
        f_g = jax.nn.sigmoid(gates[:, 1 * G:2 * G])
        g_g = jnp.tanh(gates[:, 2 * G:3 * G])
        o_g = jax.nn.sigmoid(gates[:, 3 * G:4 * G])
        c_new = f_g * c_scr[...] + i_g * g_g
        h_new = o_g * jnp.tanh(c_new)
        c_scr[...] = c_new
        h_scr[...] = h_new

        # Accumulate hidden outputs in VMEM (no per-step HBM stores).
        accf[t] = h_new[:, 0:Hp]                 # forward hidden belongs to time t
        accb[T - 1 - t] = h_new[:, Hp:G]         # backward hidden belongs to time T-1-t

        # Fused fc epilogue: compute logits once and write the whole (T, B, O)
        # resident output block in a single final writeback.
        @pl.when(t == T - 1)
        def _():
            wf = wfc_ref[0:Hp, :]
            wb = wfc_ref[Hp:G, :]
            bias = bfc_ref[...]
            for s in range(T):  # one-time epilogue; T is a static Python int
                logit_s = (jnp.dot(accf[s].astype(matmul_dtype), wf,
                                   preferred_element_type=jnp.float32)
                           + jnp.dot(accb[s].astype(matmul_dtype), wb,
                                     preferred_element_type=jnp.float32)
                           + bias)
                out_ref[s] = logit_s.astype(out_ref.dtype)

    return kernel


def _bilstm_recurrence(xp_comb, whh_bd, wfc_p, b_fc, T, B, Hp, O, matmul_dtype):
    G = 2 * Hp
    kernel = _make_bilstm_kernel(T, Hp, matmul_dtype)
    return pl.pallas_call(
        kernel,
        out_shape=jax.ShapeDtypeStruct((T, B, O), jnp.float32),
        grid_spec=pltpu.PrefetchScalarGridSpec(
            num_scalar_prefetch=0,
            grid=(T,),
            in_specs=[
                pl.BlockSpec((1, B, 4 * G), lambda t: (t, 0, 0)),   # x-projection, per step
                pl.BlockSpec((G, 4 * G), lambda t: (0, 0)),         # block-diag W_hh (resident)
                pl.BlockSpec((G, O), lambda t: (0, 0)),             # fc weight (resident)
                pl.BlockSpec((1, O), lambda t: (0, 0)),             # fc bias
            ],
            out_specs=pl.BlockSpec((T, B, O), lambda t: (0, 0, 0)),  # resident, written at t==T-1
            scratch_shapes=[
                pltpu.VMEM((B, G), jnp.float32),       # h state [fwd | bwd]
                pltpu.VMEM((B, G), jnp.float32),       # c state [fwd | bwd]
                pltpu.VMEM((T, B, Hp), jnp.float32),   # forward hidden history
                pltpu.VMEM((T, B, Hp), jnp.float32),   # backward hidden history
            ],
        ),
        compiler_params=pltpu.CompilerParams(dimension_semantics=("arbitrary",)),
    )(xp_comb, whh_bd.astype(matmul_dtype), wfc_p.astype(matmul_dtype), b_fc)


# ----------------------------- Full BiLSTM forward -----------------------------
def bilstm_forward(x_bti, params, matmul_dtype=jnp.bfloat16):
    """x_bti: (B, T, I) float32, batch_first like PyTorch nn.LSTM(batch_first=True)."""
    B, T, I = x_bti.shape
    H = params["w_hh_f"].shape[0]
    O = params["w_fc"].shape[1]
    Hp = _round_up(H, 64)       # pad so each fused gate group is 2*Hp = 128 lanes
    G = 2 * Hp

    # One-time weight prep: padded, gate-major, direction-fused layouts.
    wih_f, b_f = _pad_gates_ih(params["w_ih_f"], params["b_f"], Hp)
    wih_b, b_b = _pad_gates_ih(params["w_ih_b"], params["b_b"], Hp)
    w_cat = jnp.concatenate([wih_f, wih_b], axis=1)        # (I, 8*Hp)
    b_cat = jnp.concatenate([b_f, b_b], axis=1)            # (1, 8*Hp)
    whh_bd = _block_diag_hh(params["w_hh_f"], params["w_hh_b"], Hp)   # (G, 4G)
    wfc_p = _pad_fc(params["w_fc"], Hp)                    # (G, O)

    # Hoisted time-parallel input projection for both directions (one MXU matmul).
    x_tbi = jnp.transpose(x_bti, (1, 0, 2))                # (T, B, I)
    x2d = x_tbi.reshape(T * B, I).astype(matmul_dtype)
    xp = _input_projection(x2d, w_cat.astype(matmul_dtype), b_cat)    # (T*B, 8*Hp) f32

    # Interleave to gate-major [fwd Hp | bwd Hp] groups and time-reverse the bwd
    # half ONCE here, so the sequential kernel reads one lane-dense block per step.
    xp = xp.reshape(T, B, 2, 4, Hp)
    xp_comb = jnp.concatenate([xp[:, :, 0], xp[::-1, :, 1]], axis=-1)  # (T, B, 4, G)
    xp_comb = xp_comb.reshape(T, B, 4 * G)

    # Fused bidirectional recurrence + fc epilogue (single pallas_call).
    logits = _bilstm_recurrence(xp_comb, whh_bd, wfc_p, params["b_fc"],
                                T, B, Hp, O, matmul_dtype)  # (T, B, O)
    return jnp.transpose(logits, (1, 0, 2))                 # (B, T, O)


# ----------------------------- Pure-JAX reference -----------------------------
def lstm_ref_dir(x_tbi, w_ih_T, w_hh_T, bias, reverse, matmul_dtype):
    T, B, I = x_tbi.shape
    H = w_hh_T.shape[0]
    xs = x_tbi[::-1] if reverse else x_tbi
    wih = w_ih_T.astype(matmul_dtype)
    whh = w_hh_T.astype(matmul_dtype)

    def step(carry, x_t):
        h, c = carry
        g = (jnp.dot(x_t.astype(matmul_dtype), wih, preferred_element_type=jnp.float32)
             + jnp.dot(h.astype(matmul_dtype), whh, preferred_element_type=jnp.float32)
             + bias[0])
        i = jax.nn.sigmoid(g[:, 0:H])
        f = jax.nn.sigmoid(g[:, H:2 * H])
        gg = jnp.tanh(g[:, 2 * H:3 * H])
        o = jax.nn.sigmoid(g[:, 3 * H:4 * H])
        c = f * c + i * gg
        h = o * jnp.tanh(c)
        return (h, c), h

    init = (jnp.zeros((B, H), jnp.float32), jnp.zeros((B, H), jnp.float32))
    _, hs = lax.scan(step, init, xs)
    return hs[::-1] if reverse else hs


def bilstm_ref(x_bti, params, matmul_dtype=jnp.float32):
    x_tbi = jnp.transpose(x_bti, (1, 0, 2))
    f = lstm_ref_dir(x_tbi, params["w_ih_f"], params["w_hh_f"], params["b_f"],
                     False, matmul_dtype)
    b = lstm_ref_dir(x_tbi, params["w_ih_b"], params["w_hh_b"], params["b_b"],
                     True, matmul_dtype)
    out = jnp.transpose(jnp.concatenate([f, b], axis=-1), (1, 0, 2))   # (B, T, 2H)
    return (jnp.dot(out.astype(matmul_dtype), params["w_fc"].astype(matmul_dtype),
                    preferred_element_type=jnp.float32)
            + params["b_fc"][0])


# ----------------------------- Main -----------------------------
if __name__ == "__main__":
    # Shapes consistent with the module: glove-50d embeddings in, hidden size
    # (shrunk from 100 for the test), POS-tag-sized output.
    B, T, I, H, O = 2, 8, 50, 32, 10

    key = jax.random.PRNGKey(0)
    ks = jax.random.split(key, 9)
    scale = 0.1
    params = {
        # Stored pre-transposed: (in, 4H)/(H, 4H) so the math is x @ W.
        # Gate order i, f, g, o; per-direction bias = b_ih + b_hh folded.
        "w_ih_f": scale * jax.random.normal(ks[0], (I, 4 * H), jnp.float32),
        "w_hh_f": scale * jax.random.normal(ks[1], (H, 4 * H), jnp.float32),
        "b_f":    scale * jax.random.normal(ks[2], (1, 4 * H), jnp.float32),
        "w_ih_b": scale * jax.random.normal(ks[3], (I, 4 * H), jnp.float32),
        "w_hh_b": scale * jax.random.normal(ks[4], (H, 4 * H), jnp.float32),
        "b_b":    scale * jax.random.normal(ks[5], (1, 4 * H), jnp.float32),
        "w_fc":   scale * jax.random.normal(ks[6], (2 * H, O), jnp.float32),
        "b_fc":   scale * jax.random.normal(ks[7], (1, O), jnp.float32),
    }
    x = jax.random.normal(ks[8], (B, T, I), jnp.float32)

    # f32 path: strict semantic check vs the pure-JAX lax.scan reference.
    out_f32 = jax.block_until_ready(bilstm_forward(x, params, jnp.float32))
    ref_f32 = jax.block_until_ready(bilstm_ref(x, params, jnp.float32))
    assert out_f32.shape == (B, T, O), out_f32.shape
    err_f32 = float(jnp.max(jnp.abs(out_f32 - ref_f32)))
    assert err_f32 < 2e-4, err_f32

    # bf16-MXU path (production config per perf review): compare against a
    # reference that also rounds matmul operands to bf16 (f32 accumulation),
    # plus a loose sanity check against full-f32 semantics.
    out_bf16 = jax.block_until_ready(bilstm_forward(x, params, jnp.bfloat16))
    ref_bf16 = jax.block_until_ready(bilstm_ref(x, params, jnp.bfloat16))
    err_bf16 = float(jnp.max(jnp.abs(out_bf16 - ref_bf16)))
    assert err_bf16 < 5e-3, err_bf16
    assert float(jnp.max(jnp.abs(out_bf16 - ref_f32))) < 1e-1

    print("KERNEL_OK")
</pallas_src>

<mosaic_0001>
module attributes {stable_mosaic.version = 11 : i64} {
  func.func @_proj_kernel(%arg0: i32, %arg1: memref<16x50xf32, #tpu.memory_space<vmem>>, %arg2: memref<50x512xf32, #tpu.memory_space<vmem>>, %arg3: memref<1x512xf32, #tpu.memory_space<vmem>>, %arg4: memref<16x512xf32, #tpu.memory_space<vmem>>) attributes {dimension_semantics = [#tpu.dimension_semantics<arbitrary>], iteration_bounds = array<i64: 1>, scalar_prefetch = 0 : i64, scratch_operands = 0 : i64, tpu.core_type = #tpu.core_type<tc>, window_params = [{pipeline_mode = #tpu.pipeline_mode<synchronous>, transform_indices = @transform_0, window_bounds = array<i64: 16, 50>}, {pipeline_mode = #tpu.pipeline_mode<synchronous>, transform_indices = @transform_1, window_bounds = array<i64: 50, 512>}, {pipeline_mode = #tpu.pipeline_mode<synchronous>, transform_indices = @transform_2, window_bounds = array<i64: 1, 512>}, {pipeline_mode = #tpu.pipeline_mode<synchronous>, transform_indices = @transform_3, window_bounds = array<i64: 16, 512>}]} {
    %c0 = arith.constant 0 : index
    %c0_0 = arith.constant 0 : index
    %0 = vector.load %arg1[%c0, %c0_0] : memref<16x50xf32, #tpu.memory_space<vmem>>, vector<16x50xf32>
    %c0_1 = arith.constant 0 : index
    %c0_2 = arith.constant 0 : index
    %1 = vector.load %arg2[%c0_1, %c0_2] : memref<50x512xf32, #tpu.memory_space<vmem>>, vector<50x512xf32>
    %cst = arith.constant dense<0.000000e+00> : vector<16x512xf32>
    %2 = tpu.matmul %0, %1, %cst {dimension_numbers = #tpu.dot_dimension_numbers<[1], [0], [0], [1], [0, 0, 1, 1], [], []>} : vector<16x50xf32>, vector<50x512xf32>, vector<16x512xf32> -> vector<16x512xf32>
    %c0_3 = arith.constant 0 : index
    %c0_4 = arith.constant 0 : index
    %3 = vector.load %arg3[%c0_3, %c0_4] : memref<1x512xf32, #tpu.memory_space<vmem>>, vector<1x512xf32>
    %4 = vector.broadcast %3 : vector<1x512xf32> to vector<16x512xf32>
    %5 = arith.addf %2, %4 : vector<16x512xf32>
    %c0_5 = arith.constant 0 : index
    %c0_6 = arith.constant 0 : index
    %6 = vector.load %arg4[%c0_5, %c0_6] : memref<16x512xf32, #tpu.memory_space<vmem>>, vector<16x512xf32>
    tpu.vector_store %arg4[%c0_5, %c0_6], %5 {strides = array<i32>} : memref<16x512xf32, #tpu.memory_space<vmem>>, vector<16x512xf32>,
    return
  }
  func.func @transform_0(%arg0: i32) -> (i32, i32) {
    %c0_i32 = arith.constant 0 : i32
    %c0_i32_0 = arith.constant 0 : i32
    %c0_i32_1 = arith.constant 0 : i32
    return %c0_i32, %c0_i32_0 : i32, i32
  }
  func.func @transform_1(%arg0: i32) -> (i32, i32) {
    %c0_i32 = arith.constant 0 : i32
    %c0_i32_0 = arith.constant 0 : i32
    %c0_i32_1 = arith.constant 0 : i32
    return %c0_i32, %c0_i32_0 : i32, i32
  }
  func.func @transform_2(%arg0: i32) -> (i32, i32) {
    %c0_i32 = arith.constant 0 : i32
    %c0_i32_0 = arith.constant 0 : i32
    %c0_i32_1 = arith.constant 0 : i32
    return %c0_i32, %c0_i32_0 : i32, i32
  }
  func.func @transform_3(%arg0: i32) -> (i32, i32) {
    %c0_i32 = arith.constant 0 : i32
    %c0_i32_0 = arith.constant 0 : i32
    %c0_i32_1 = arith.constant 0 : i32
    return %c0_i32, %c0_i32_0 : i32, i32
  }
}

</mosaic_0001>

<bundles_post_ra>
// kernel: tpu_custom_call.1
= control target key start
LH: loop header
LB: loop body
LE: loop exit
PB: predicated region body
PF: predicated region fallthrough
CT: control target
= control target key end

     0   :  { %8 = vsyncpa [#allocation3], 0  ;;  %s484_s0 = inlined_call_operand.hbm [shape: f32[16,50], index: 0, kind: input, shape index: {}]   ;;  %s485_s1 = inlined_call_operand.hbm [shape: f32[50,512], index: 1, kind: input, shape index: {}]   ;;  %s486_s2 = inlined_call_operand.vmem [shape: f32[1,512], index: 2, kind: input, shape index: {}]   ;;  %s487_s3 = inlined_call_operand.hbm [shape: f32[16,512], index: 3, kind: output, shape index: {}]  }
   0x1   :  { %9 = vsyncpa [#allocation6], 0 }
   0x2   :  { %10 = vsyncpa [#allocation4], 0  ;;  %s407_s12 = smov [#allocation2]   ;;  %s335_s16 = scalar_lea.hbm %s484_s0, 256 }
   0x3   :  { %s16_s13 = sshll.u32 %s407_s12, 4  ;;  %p336_p0 = scmp.ne.s32.totalorder %s484_s0, %s335_s16  ;;  %s17_s13 = int_to_ptr.vmem [resolvable:$true] %s16_s13 }
   0x4   :  { %p339_p1 = scmp.lt.u32.totalorder %s335_s16, %s484_s0 }
   0x6   :  { %p341_p2 = pnand %p339_p1, %p336_p0 }
   0x8   :  { %344 = shalt.err (!%p341_p2)
}
   0x9   :  { %s345_s21 = scalar_lea.vmem %s17_s13, 256  ;;  %p350_p4 = scmp.lt.s32.totalorder %s17_s13, %s17_s13 }
   0xa   :  { %p346_p3 = scmp.ne.s32.totalorder %s17_s13, %s345_s21  ;;  %p351_p5 = scmp.lt.s32.totalorder %s345_s21, %s345_s21 }
   0xc   :  { %p352_p6 = por %p351_p5, %p350_p4 }
   0xe   :  { %p353_p7 = pnand %p352_p6, %p346_p3 }
  0x10   :  { %356 = shalt.err (!%p353_p7)
}
  0x11   :  { %s408_s22 = smov 128   ;;  %s409_s23 = smov 8  }
  0x12   :  { %22 = dma.hbm_to_vmem [thread:$0]  %s484_s0, 256, %s17_s13, [#allocation3], %s408_s22, %s408_s22, %s409_s23  }
  0x13   :  { %s410_s26 = smov [#allocation5]   ;;  %s357_s30 = scalar_lea.hbm %s485_s1, 3584 }
  0x14   :  { %s28_s27 = sshll.u32 %s410_s26, 4  ;;  %p358_p8 = scmp.ne.s32.totalorder %s485_s1, %s357_s30  ;;  %s29_s27 = int_to_ptr.vmem [resolvable:$true] %s28_s27 }
  0x15   :  { %p361_p9 = scmp.lt.u32.totalorder %s357_s30, %s485_s1 }
  0x17   :  { %p363_p10 = pnand %p361_p9, %p358_p8 }
  0x19   :  { %366 = shalt.err (!%p363_p10)
}
  0x1a   :  { %s367_s8 = scalar_lea.vmem %s29_s27, 3584  ;;  %p372_p12 = scmp.lt.s32.totalorder %s29_s27, %s29_s27 }
  0x1b   :  { %p368_p11 = scmp.ne.s32.totalorder %s29_s27, %s367_s8  ;;  %p373_p13 = scmp.lt.s32.totalorder %s367_s8, %s367_s8 }
  0x1d   :  { %p374_p0 = por %p373_p13, %p372_p12 }
  0x1f   :  { %p375_p1 = pnand %p374_p0, %p368_p11 }
  0x21   :  { %378 = shalt.err (!%p375_p1)
}
  0x22   :  { %s411_s0 = smov 512   ;;  %s412_s9 = smov 32  }
  0x23   :  { %34 = dma.hbm_to_vmem [thread:$0]  %s485_s1, 3584, %s29_s27, [#allocation6], %s411_s0, %s411_s0, %s412_s9  }
  0x24   :  { %401 = dma.done.wait [#allocation3], 256  }
  0x25   :  { %402 = vsyncadd [#allocation3], 4294967040 }
  0x26   :  { %403 = dma.done.wait [#allocation6], 3584  }
  0x27   :  { %404 = vsyncadd [#allocation6], 4294963712  ;;  %v413_v0 = vmov 0.0   ;;  %v46_v1 = vld [vmem:[#allocation5 + $0x8] sm:$0xff]  ;;  %v48_v3 = vld [vmem:[#allocation5 + $0x18] sm:$0xff]  ;;  %vm102_vm0 = vcmask 1041408   ;;  %v75_v43 = vlaneseq }
  0x28   :  { %179 = vmatprep.mubr.f32.mxu0 %v413_v0  ;;  %256 = vmatprep.mubr.f32.mxu1 %v413_v0  ;;  %v50_v2 = vld [vmem:[#allocation5 + $0x28] sm:$0xff]  ;;  %v52_v5 = vld [vmem:[#allocation5 + $0x38] sm:$0xff]  ;;  %v45_v6 = vld [vmem:[#allocation5] sm:$0xff]  ;;  %vm95_vm1 = vcmask 408576  }
  0x29   :  { %v303_v4 = vpack.c.bf16 %v50_v2, %v46_v1  ;;  %v49_v7 = vld [vmem:[#allocation5 + $0x20] sm:$0xff]  ;;  %v315_v8 = vpack.c.bf16 %v52_v5, %v48_v3  ;;  %v47_v10 = vld [vmem:[#allocation5 + $0x10] sm:$0xff]  ;;  %v54_v12 = vld [vmem:[#allocation5 + $0x48] sm:$0xff]  ;;  %v76_v44 = vshrl.u32 %v75_v43, 7 }
  0x2a   :  { %v305_v9 = vpack.c.bf16 %v49_v7, %v45_v6  ;;  %v51_v11 = vld [vmem:[#allocation5 + $0x30] sm:$0xff]  ;;  %v58_v14 = vld [vmem:[#allocation5 + $0x68] sm:$0xff]  ;;  %v56_v15 = vld [vmem:[#allocation5 + $0x58] sm:$0xff] }
  0x2b   :  { %304 = vmatprep.subr.bf16.mxu0 %v303_v4  ;;  %v317_v13 = vpack.c.bf16 %v51_v11, %v47_v10  ;;  %v60_v16 = vld [vmem:[#allocation5 + $0x78] sm:$0xff]  ;;  %316 = vmatprep.subr.bf16.mxu1 %v315_v8  ;;  %v307_v17 = vpack.c.bf16 %v58_v14, %v54_v12  ;;  %v53_v19 = vld [vmem:[#allocation5 + $0x40] sm:$0xff]  ;;  %v55_v21 = vld [vmem:[#allocation5 + $0x50] sm:$0xff]  ;;  %v77_v45 = vsub.s32 0, %v76_v44  ;;  %v85_v47 = vsub.s32 2, %v76_v44 }
  0x2c   :  { %306 = vmatpush1.bf16.msra.mxu0 %v305_v9  ;;  %v319_v18 = vpack.c.bf16 %v60_v16, %v56_v15  ;;  %v57_v20 = vld [vmem:[#allocation5 + $0x60] sm:$0xff]  ;;  %v59_v23 = vld [vmem:[#allocation5 + $0x70] sm:$0xff]  ;;  %v62_v24 = vld [vmem:[#allocation5 + $0x88] sm:$0xff]  ;;  %v81_v48 = vsub.s32 1, %v76_v44  ;;  %v89_v49 = vsub.s32 3, %v76_v44 }
  0x2d   :  { %318 = vmatpush1.bf16.msra.mxu1 %v317_v13  ;;  %v309_v22 = vpack.c.bf16 %v57_v20, %v53_v19  ;;  %v66_v25 = vld [vmem:[#allocation5 + $0xa8] sm:$0xff]  ;;  %308 = vmatprep.subr.bf16.mxu0 %v307_v17  ;;  %v321_v26 = vpack.c.bf16 %v59_v23, %v55_v21  ;;  %v64_v28 = vld [vmem:[#allocation5 + $0x98] sm:$0xff]  ;;  %v61_v30 = vld [vmem:[#allocation5 + $0x80] sm:$0xff] }
  0x2e   :  { %320 = vmatprep.subr.bf16.mxu1 %v319_v18  ;;  %v311_v27 = vpack.c.bf16 %v66_v25, %v62_v24  ;;  %v68_v29 = vld [vmem:[#allocation5 + $0xb8] sm:$0xff]  ;;  %v65_v32 = vld [vmem:[#allocation5 + $0xa0] sm:$0xff]  ;;  %v63_v33 = vld [vmem:[#allocation5 + $0x90] sm:$0xff] }
  0x2f   :  { %v323_v31 = vpack.c.bf16 %v68_v29, %v64_v28  ;;  %v67_v34 = vld [vmem:[#allocation5 + $0xb0] sm:$0xff]  ;;  %v313_v35 = vpack.c.bf16 %v65_v32, %v61_v30  ;;  %v70_v37 = vld [vmem:[#allocation5 + $0xc8] sm:$0x3]  ;;  %v72_v38 = vld [vmem:[#allocation5 + $0xd8] sm:$0x3] }
  0x30   :  { %310 = vmatpush1.bf16.msra.mxu0 %v309_v22  ;;  %v325_v36 = vpack.c.bf16 %v67_v34, %v63_v33  ;;  %v69_v39 = vld [vmem:[#allocation5 + $0xc0] sm:$0x3]  ;;  %v71_v40 = vld [vmem:[#allocation5 + $0xd0] sm:$0x3]  ;;  %v44_v42 = vld [vmem:[#allocation2 + $0x8] sm:$0xff] }
  0x31   :  { %322 = vmatpush1.bf16.msra.mxu1 %v321_v26  ;;  %312 = vmatprep.subr.bf16.mxu0 %v311_v27  ;;  %v43_v41 = vld [vmem:[#allocation2] sm:$0xff] }
  0x32   :  { %324 = vmatprep.subr.bf16.mxu1 %v323_v31  ;;  %v73_v46 = vld [vmem:[%s486_s2] sm:$0xf]  ;;  %s414_s2 = smov [#allocation7]  }
  0x33   :  { %v78_v50 = vrot.slane %v73_v46, %v77_v45  ;;  %v86_v51 = vrot.slane %v73_v46, %v85_v47  ;;  %v82_v52 = vrot.slane %v73_v46, %v81_v48  ;;  %v90_v53 = vrot.slane %v73_v46, %v89_v49  ;;  %s282_s13 = sshll.u32 %s414_s2, 4  ;;  %s283_s13 = int_to_ptr.vmem [resolvable:$true] %s282_s13 }
  0x34   :  { %314 = vmatpush1.bf16.msra.mxu0 %v313_v35  ;;  %s379_s14 = scalar_lea.vmem %s283_s13, 1024  ;;  %p384_p3 = scmp.lt.s32.totalorder %s283_s13, %s283_s13 }
  0x35   :  { %326 = vmatpush1.bf16.msra.mxu1 %v325_v36  ;;  %295 = vmatprep.subr.msk.mxu0 %vm102_vm0, %v70_v37  ;;  %p380_p2 = scmp.ne.s32.totalorder %s283_s13, %s379_s14  ;;  %p385_p4 = scmp.lt.s32.totalorder %s379_s14, %s379_s14 }
  0x36   :  { %299 = vmatprep.subr.msk.mxu1 %vm102_vm0, %v72_v38 }
  0x37   :  { %p386_p5 = por %p385_p4, %p384_p3 }
  0x38   :  { %296 = vmatpush1.msk.msra.mxu0 %vm102_vm0, %v69_v39 }
  0x39   :  { %300 = vmatpush1.msk.msra.mxu1 %vm102_vm0, %v71_v40  ;;  %297 = vmatmul.mubr.msk.f32.vlgmr.msra.gmra.mrb[0].mxu0 %vm95_vm1, %v43_v41  ;;  %p387_p6 = pnand %p386_p5, %p380_p2 }
  0x3a   :  { %301 = vmatmul.mubr.msk.f32.vlgmr.msra.gmra.mrb[0].mxu1 %vm95_vm1, %v43_v41  ;;  %185 = vmatprep.mubr.f32.mxu0 %v413_v0 }
  0x3b   :  { %262 = vmatprep.mubr.f32.mxu1 %v413_v0 }
  0x3d   :  { %298 = vmatmul.mubr.msk.f32.gmra.mrb[2].mxu0 %vm95_vm1, %v44_v42 }
  0x3e   :  { %302 = vmatmul.mubr.msk.f32.gmra.mrb[2].mxu1 %vm95_vm1, %v44_v42 }
 0x10c   :  { %v181_v54 = vpop.f32.mrb[0].mxu0 }
 0x10d   :  { %v182_v55 = vadd.f32 %v181_v54, %v78_v50  ;;  %v258_v56 = vpop.f32.mrb[0].mxu1  ;;  %v183_v57 = vpop.f32.mrb[1].mxu0 }
 0x10e   :  { %v259_v58 = vadd.f32 %v258_v56, %v86_v51  ;;  %v184_v59 = vadd.f32 %v183_v57, %v82_v52  ;;  %v260_v60 = vpop.f32.mrb[1].mxu1 }
 0x10f   :  { %269 = vst [vmem:[#allocation7] sm:$0xff] %v182_v55  ;;  %v261_v61 = vadd.f32 %v260_v60, %v90_v53 }
 0x110   :  { %271 = vst [vmem:[#allocation7 + $0x10] sm:$0xff] %v259_v58  ;;  %270 = vst [vmem:[#allocation7 + $0x8] sm:$0xff] %v184_v59  ;;  %v187_v62 = vpop.f32.mrb[2].mxu0 }
 0x111   :  { %272 = vst [vmem:[#allocation7 + $0x18] sm:$0xff] %v261_v61  ;;  %v188_v63 = vadd.f32 %v187_v62, %v78_v50  ;;  %v264_v0 = vpop.f32.mrb[2].mxu1  ;;  %v189_v1 = vpop.f32.mrb[3].mxu0 }
 0x112   :  { %v265_v2 = vadd.f32 %v264_v0, %v86_v51  ;;  %v190_v3 = vadd.f32 %v189_v1, %v82_v52  ;;  %v266_v4 = vpop.f32.mrb[3].mxu1 }
 0x113   :  { %273 = vst [vmem:[#allocation7 + $0x20] sm:$0xff] %v188_v63  ;;  %v267_v5 = vadd.f32 %v266_v4, %v90_v53 }
 0x114   :  { %275 = vst [vmem:[#allocation7 + $0x30] sm:$0xff] %v265_v2  ;;  %274 = vst [vmem:[#allocation7 + $0x28] sm:$0xff] %v190_v3 }
 0x115   :  { %276 = vst [vmem:[#allocation7 + $0x38] sm:$0xff] %v267_v5 }
 0x116   :  { %390 = shalt.err (!%p387_p6)
}
 0x117   :  { %s391_s17 = scalar_lea.hbm %s487_s3, 1024 }
 0x118   :  { %p392_p7 = scmp.ne.s32.totalorder %s487_s3, %s391_s17  ;;  %p395_p8 = scmp.lt.u32.totalorder %s391_s17, %s487_s3 }
 0x11a   :  { %p397_p9 = pnand %p395_p8, %p392_p7 }
 0x11c   :  { %400 = shalt.err (!%p397_p9)
}
 0x11d   :  { %288 = dma.vmem_to_hbm [thread:$0]  %s283_s13, 1024, %s487_s3, [#allocation4], %s411_s0, %s411_s0, %s412_s9  }
 0x11e   :  { %405 = dma.done.wait [#allocation4], 1024  }
 0x11f   :  { %406 = vsyncadd [#allocation4], 4294966272 }
 0x120   :  { %292 = vsyncpa [#allocation3], 1 }
 0x121   :  { %293 = vsyncpa [#allocation6], 1 }
 0x122   :  { %294 = vsyncpa [#allocation4], 1 }

</bundles_post_ra>
